<compile_context>
chip_gen: v7x
topology: tpu7x:2x2x1
jax: 0.10.0
libtpu: 0.0.40
codegen_flags: <defaults>
</compile_context>

<pallas_src>
import functools

import jax
import jax.numpy as jnp
from jax.experimental import pallas as pl
from jax.experimental.pallas import tpu as pltpu

_LANE = 128                    # vreg lane width (last dim)
_SUBLANE = 8                   # f32 sublane count (second-to-last dim)
_VMEM_BUDGET = 48 * 1024 * 1024   # conservative vs v7x's 64 MiB physical VMEM


def _round_up(x: int, m: int) -> int:
    return (x + m - 1) // m * m


def _cdiv(a: int, b: int) -> int:
    return (a + b - 1) // b


def _fused_mlp_kernel(*refs, num_layers, activation, compute_dtype):
    # refs = (x_ref, w0_ref, ..., w_{L-1}_ref, o_ref); all tiles live in VMEM.
    x_ref = refs[0]
    w_refs = refs[1:1 + num_layers]
    o_ref = refs[1 + num_layers]

    h = x_ref[...].astype(jnp.float32)
    for i in range(num_layers):
        # bf16 operands on the MXU, f32 accumulation.
        h = jnp.dot(h.astype(compute_dtype), w_refs[i][...],
                    preferred_element_type=jnp.float32)
        if i < num_layers - 1:          # activation between all but last layer
            h = activation(h)           # applied on the f32 accumulator
    o_ref[...] = h.astype(o_ref.dtype)


def fused_mlp_pallas(x2, weights_pad, *, batch_tile, activation,
                     compute_dtype, vmem_limit_bytes):
    """x2: [B, d_in] (unpadded); weights_pad[i]: [k_i, n_i] padded bf16."""
    B, d_in = x2.shape
    num_layers = len(weights_pad)
    d_out = weights_pad[-1].shape[1]    # last layer is kept at its true width

    in_specs = [pl.BlockSpec((batch_tile, d_in), lambda i: (i, 0))]
    for w in weights_pad:
        # Grid-invariant whole-weight block: single-buffer it (no pointless
        # double-buffered VMEM residency / re-DMA).
        in_specs.append(pl.BlockSpec(w.shape, lambda i: (0, 0),
                                     pipeline_mode=pl.Buffered(1)))
    out_specs = pl.BlockSpec((batch_tile, d_out), lambda i: (i, 0))

    kernel = functools.partial(_fused_mlp_kernel, num_layers=num_layers,
                               activation=activation,
                               compute_dtype=compute_dtype)

    return pl.pallas_call(
        kernel,
        out_shape=jax.ShapeDtypeStruct((B, d_out), x2.dtype),
        grid=(_cdiv(B, batch_tile),),   # uneven last block handled by Pallas
        in_specs=in_specs,
        out_specs=out_specs,
        compiler_params=pltpu.CompilerParams(
            # Batch-tile axis is independent -> megacore-shardable on v7x.
            dimension_semantics=("parallel",),
            vmem_limit_bytes=vmem_limit_bytes,
        ),
    )(x2, *weights_pad)


class MLPPallas:
    """Mirrors the PyTorch MLP: Linear(bias=False) layers with `function`
    between all but the last, fused into one Pallas TPU kernel."""

    def __init__(self, layers_dim, key, function=jax.nn.relu,
                 compute_dtype=jnp.bfloat16):
        assert len(layers_dim) >= 2
        self.layers_dim = list(layers_dim)
        self.function = function
        self.compute_dtype = compute_dtype

        self.weights_t = []     # true [in, out] f32 (for reference checks)
        weights_pad = []        # kernel layout: [k_pad, n_pad] in compute_dtype
        k_width = layers_dim[0]           # width of h entering the layer
        n_layers = len(layers_dim) - 1
        for i, (din, dout) in enumerate(zip(layers_dim[:-1], layers_dim[1:])):
            key, sub = jax.random.split(key)
            # nn.Linear default init scale: uniform(+/- 1/sqrt(fan_in)).
            bound = 1.0 / (din ** 0.5)
            w_pt = jax.random.uniform(sub, (dout, din), dtype=jnp.float32,
                                      minval=-bound, maxval=bound)  # torch [out, in]
            w_t = w_pt.T                                            # kernel [in, out]
            self.weights_t.append(w_t)

            last = (i == n_layers - 1)
            # Hidden widths padded to 128 lanes; last layer stays at true width
            # so the kernel writes the output unpadded (no wrapper slice).
            n_pad = dout if last else _round_up(dout, _LANE)
            # Zero K-rows beyond `din` absorb the padded columns of the
            # previous layer's output (correct for any finite activation(0)).
            w_pad = jnp.zeros((k_width, n_pad), jnp.float32)
            w_pad = w_pad.at[:din, :dout].set(w_t)
            weights_pad.append(w_pad.astype(compute_dtype))
            k_width = n_pad
        self.weights_pad = tuple(weights_pad)

        self._forward = jax.jit(self._forward_impl)

    def _pick_batch_tile(self, B, act_itemsize):
        d_in, d_out = self.layers_dim[0], self.layers_dim[-1]
        max_w = max([d_in] + [w.shape[1] for w in self.weights_pad])
        weight_bytes = sum(int(w.size) * w.dtype.itemsize
                           for w in self.weights_pad)   # single-buffered

        bt = min(512, _round_up(max(B, 1), _SUBLANE))
        if B > _SUBLANE:
            # Ensure >= 2 grid steps so both v7x TensorCores get work.
            bt = min(bt, _round_up(_cdiv(B, 2), _SUBLANE))

        def vmem_est(t):
            return (weight_bytes
                    + 2 * t * d_in * act_itemsize      # double-buffered x tile
                    + 2 * t * d_out * act_itemsize     # double-buffered out tile
                    + 4 * t * max_w * 4)               # f32 intermediates headroom

        while bt > _SUBLANE and vmem_est(bt) > _VMEM_BUDGET:
            bt = max(_SUBLANE, _round_up(bt // 2, _SUBLANE))
        return bt

    def _forward_impl(self, x):
        d_in, d_out = self.layers_dim[0], self.layers_dim[-1]
        lead_shape = x.shape[:-1]
        x2 = x.reshape(-1, d_in)             # leading-dim collapse only (no copy)
        B = x2.shape[0]

        bt = self._pick_batch_tile(B, x2.dtype.itemsize)
        y = fused_mlp_pallas(x2, self.weights_pad, batch_tile=bt,
                             activation=self.function,
                             compute_dtype=self.compute_dtype,
                             vmem_limit_bytes=_VMEM_BUDGET)
        return y.reshape(*lead_shape, d_out)

    def __call__(self, x):
        return self._forward(x)


if __name__ == "__main__":
    key = jax.random.PRNGKey(0)
    key_x, key_w = jax.random.split(key)

    layers_dim = [32, 64, 48, 16]
    batch = 8

    mlp = MLPPallas(layers_dim, key_w)

    x = jax.random.normal(key_x, (batch, layers_dim[0]), dtype=jnp.float32)
    out = jax.block_until_ready(mlp(x))

    # Precision-matched reference: same bf16 operands / f32 accumulation.
    ref = x
    n = len(mlp.weights_t)
    for i, w_t in enumerate(mlp.weights_t):
        ref = jnp.dot(ref.astype(jnp.bfloat16), w_t.astype(jnp.bfloat16),
                      preferred_element_type=jnp.float32)
        if i < n - 1:
            ref = jnp.maximum(ref, 0.0)
    ref = ref.astype(out.dtype)

    assert out.shape == (batch, layers_dim[-1])
    max_err = float(jnp.max(jnp.abs(out - ref)))
    assert jnp.allclose(out, ref, atol=2e-2, rtol=2e-2), max_err

    print("KERNEL_OK")
</pallas_src>

<mosaic_0001>
module attributes {stable_mosaic.version = 11 : i64} {
  func.func @_fused_mlp_kernel(%arg0: i32, %arg1: memref<8x32xf32, #tpu.memory_space<vmem>>, %arg2: memref<32x128xbf16, #tpu.memory_space<vmem>>, %arg3: memref<128x128xbf16, #tpu.memory_space<vmem>>, %arg4: memref<128x16xbf16, #tpu.memory_space<vmem>>, %arg5: memref<8x16xf32, #tpu.memory_space<vmem>>) attributes {dimension_semantics = [#tpu.dimension_semantics<parallel>], iteration_bounds = array<i64: 1>, scalar_prefetch = 0 : i64, scratch_operands = 0 : i64, tpu.core_type = #tpu.core_type<tc>, window_params = [{transform_indices = @transform_0, window_bounds = array<i64: 8, 32>}, {pipeline_mode = #tpu.pipeline_mode<synchronous>, transform_indices = @transform_1, window_bounds = array<i64: 32, 128>}, {pipeline_mode = #tpu.pipeline_mode<synchronous>, transform_indices = @transform_2, window_bounds = array<i64: 128, 128>}, {pipeline_mode = #tpu.pipeline_mode<synchronous>, transform_indices = @transform_3, window_bounds = array<i64: 128, 16>}, {transform_indices = @transform_4, window_bounds = array<i64: 8, 16>}]} {
    %c0 = arith.constant 0 : index
    %c0_0 = arith.constant 0 : index
    %0 = vector.load %arg1[%c0, %c0_0] : memref<8x32xf32, #tpu.memory_space<vmem>>, vector<8x32xf32>
    %1 = arith.truncf %0 : vector<8x32xf32> to vector<8x32xbf16>
    %c0_1 = arith.constant 0 : index
    %c0_2 = arith.constant 0 : index
    %2 = vector.load %arg2[%c0_1, %c0_2] : memref<32x128xbf16, #tpu.memory_space<vmem>>, vector<32x128xbf16>
    %cst = arith.constant dense<0.000000e+00> : vector<8x128xf32>
    %3 = tpu.matmul %1, %2, %cst {dimension_numbers = #tpu.dot_dimension_numbers<[1], [0], [0], [1], [0, 0, 1, 1], [], []>} : vector<8x32xbf16>, vector<32x128xbf16>, vector<8x128xf32> -> vector<8x128xf32>
    %cst_3 = arith.constant 0.000000e+00 : f32
    %4 = vector.broadcast %cst_3 : f32 to vector<8x128xf32>
    %5 = arith.maximumf %3, %4 : vector<8x128xf32>
    %6 = arith.truncf %5 : vector<8x128xf32> to vector<8x128xbf16>
    %c0_4 = arith.constant 0 : index
    %c0_5 = arith.constant 0 : index
    %7 = vector.load %arg3[%c0_4, %c0_5] : memref<128x128xbf16, #tpu.memory_space<vmem>>, vector<128x128xbf16>
    %cst_6 = arith.constant dense<0.000000e+00> : vector<8x128xf32>
    %8 = tpu.matmul %6, %7, %cst_6 {dimension_numbers = #tpu.dot_dimension_numbers<[1], [0], [0], [1], [0, 0, 1, 1], [], []>} : vector<8x128xbf16>, vector<128x128xbf16>, vector<8x128xf32> -> vector<8x128xf32>
    %cst_7 = arith.constant 0.000000e+00 : f32
    %9 = vector.broadcast %cst_7 : f32 to vector<8x128xf32>
    %10 = arith.maximumf %8, %9 : vector<8x128xf32>
    %11 = arith.truncf %10 : vector<8x128xf32> to vector<8x128xbf16>
    %c0_8 = arith.constant 0 : index
    %c0_9 = arith.constant 0 : index
    %12 = vector.load %arg4[%c0_8, %c0_9] : memref<128x16xbf16, #tpu.memory_space<vmem>>, vector<128x16xbf16>
    %cst_10 = arith.constant dense<0.000000e+00> : vector<8x16xf32>
    %13 = tpu.matmul %11, %12, %cst_10 {dimension_numbers = #tpu.dot_dimension_numbers<[1], [0], [0], [1], [0, 0, 1, 1], [], []>} : vector<8x128xbf16>, vector<128x16xbf16>, vector<8x16xf32> -> vector<8x16xf32>
    %c0_11 = arith.constant 0 : index
    %c0_12 = arith.constant 0 : index
    %14 = vector.load %arg5[%c0_11, %c0_12] : memref<8x16xf32, #tpu.memory_space<vmem>>, vector<8x16xf32>
    tpu.vector_store %arg5[%c0_11, %c0_12], %13 {strides = array<i32>} : memref<8x16xf32, #tpu.memory_space<vmem>>, vector<8x16xf32>,
    return
  }
  func.func @transform_0(%arg0: i32) -> (i32, i32) {
    %c0_i32 = arith.constant 0 : i32
    %c0_i32_0 = arith.constant 0 : i32
    return %arg0, %c0_i32 : i32, i32
  }
  func.func @transform_1(%arg0: i32) -> (i32, i32) {
    %c0_i32 = arith.constant 0 : i32
    %c0_i32_0 = arith.constant 0 : i32
    %c0_i32_1 = arith.constant 0 : i32
    return %c0_i32, %c0_i32_0 : i32, i32
  }
  func.func @transform_2(%arg0: i32) -> (i32, i32) {
    %c0_i32 = arith.constant 0 : i32
    %c0_i32_0 = arith.constant 0 : i32
    %c0_i32_1 = arith.constant 0 : i32
    return %c0_i32, %c0_i32_0 : i32, i32
  }
  func.func @transform_3(%arg0: i32) -> (i32, i32) {
    %c0_i32 = arith.constant 0 : i32
    %c0_i32_0 = arith.constant 0 : i32
    %c0_i32_1 = arith.constant 0 : i32
    return %c0_i32, %c0_i32_0 : i32, i32
  }
  func.func @transform_4(%arg0: i32) -> (i32, i32) {
    %c0_i32 = arith.constant 0 : i32
    %c0_i32_0 = arith.constant 0 : i32
    return %arg0, %c0_i32 : i32, i32
  }
}

</mosaic_0001>

<bundles_post_ra>
// kernel: _forward_impl.1
= control target key start
LH: loop header
LB: loop body
LE: loop exit
PB: predicated region body
PF: predicated region fallthrough
CT: control target
= control target key end

     0   :  { %9 = vsyncpa [#allocation3], 0  ;;  %s663_s0 = inlined_call_operand.vmem [shape: f32[8,32], index: 0, kind: input, shape index: {}]   ;;  %s664_s1 = inlined_call_operand.hbm [shape: bf16[32,128], index: 1, kind: input, shape index: {}]   ;;  %s665_s2 = inlined_call_operand.hbm [shape: bf16[128,128], index: 2, kind: input, shape index: {}]   ;;  %s666_s3 = inlined_call_operand.hbm [shape: bf16[128,16], index: 3, kind: input, shape index: {}]   ;;  %s667_s4 = inlined_call_operand.hbm [shape: f32[8,16], index: 4, kind: output, shape index: {}]  }
   0x1   :  { %10 = vsyncpa [#allocation6], 0 }
   0x2   :  { %11 = vsyncpa [#allocation4], 0  ;;  %s560_s15 = smov [#allocation5]   ;;  %s561_s17 = smov [#allocation2]  }
   0x3   :  { %s31_s16 = sshll.u32 %s560_s15, 4  ;;  %s19_s18 = sshll.u32 %s561_s17, 4  ;;  %s32_s16 = int_to_ptr.vmem [resolvable:$true] %s31_s16  ;;  %s593_s18 = int_to_ptr.vmem [resolvable:$true] %s19_s18 }
   0x4   :  { %s466_s21 = scalar_lea.hbm %s665_s2, 1024 }
   0x5   :  { %p467_p0 = scmp.ne.s32.totalorder %s665_s2, %s466_s21  ;;  %p470_p1 = scmp.lt.u32.totalorder %s466_s21, %s665_s2 }
   0x7   :  { %p472_p2 = pnand %p470_p1, %p467_p0 }
   0x9   :  { %475 = shalt.err (!%p472_p2)
}
   0xa   :  { %s476_s26 = scalar_lea.vmem %s32_s16, 1024  ;;  %p481_p4 = scmp.lt.s32.totalorder %s32_s16, %s32_s16 }
   0xb   :  { %p477_p3 = scmp.ne.s32.totalorder %s32_s16, %s476_s26  ;;  %p482_p5 = scmp.lt.s32.totalorder %s476_s26, %s476_s26 }
   0xd   :  { %p483_p6 = por %p482_p5, %p481_p4 }
   0xf   :  { %p484_p7 = pnand %p483_p6, %p477_p3 }
  0x11   :  { %487 = shalt.err (!%p484_p7)
}
  0x12   :  { %s562_s27 = smov 64   ;;  %s563_s28 = smov 4  }
  0x13   :  { %37 = dma.hbm_to_vmem [thread:$0]  %s665_s2, 1024, %s32_s16, [#allocation6], %s562_s27, %s562_s27, %s563_s28  }
  0x14   :  { %s488_s7 = scalar_lea.hbm %s664_s1, 256 }
  0x15   :  { %p489_p8 = scmp.ne.s32.totalorder %s664_s1, %s488_s7  ;;  %p492_p9 = scmp.lt.u32.totalorder %s488_s7, %s664_s1 }
  0x17   :  { %p494_p10 = pnand %p492_p9, %p489_p8 }
  0x19   :  { %497 = shalt.err (!%p494_p10)
}
  0x1a   :  { %s498_s12 = scalar_lea.vmem %s593_s18, 256  ;;  %p503_p12 = scmp.lt.s32.totalorder %s593_s18, %s593_s18 }
  0x1b   :  { %p499_p11 = scmp.ne.s32.totalorder %s593_s18, %s498_s12  ;;  %p504_p13 = scmp.lt.s32.totalorder %s498_s12, %s498_s12 }
  0x1d   :  { %p505_p0 = por %p504_p13, %p503_p12 }
  0x1f   :  { %p506_p1 = pnand %p505_p0, %p499_p11 }
  0x21   :  { %509 = shalt.err (!%p506_p1)
}
  0x22   :  { %25 = dma.hbm_to_vmem [thread:$0]  %s664_s1, 256, %s593_s18, [#allocation3], %s562_s27, %s562_s27, %s563_s28  }
  0x23   :  { %s564_s14 = smov [#allocation7]   ;;  %s510_s19 = scalar_lea.hbm %s666_s3, 1024 }
  0x24   :  { %s43_s15 = sshll.u32 %s564_s14, 4  ;;  %p511_p2 = scmp.ne.s32.totalorder %s666_s3, %s510_s19  ;;  %s44_s15 = int_to_ptr.vmem [resolvable:$true] %s43_s15 }
  0x25   :  { %p514_p3 = scmp.lt.u32.totalorder %s510_s19, %s666_s3 }
  0x27   :  { %p516_p4 = pnand %p514_p3, %p511_p2 }
  0x29   :  { %519 = shalt.err (!%p516_p4)
}
  0x2a   :  { %s520_s24 = scalar_lea.vmem %s44_s15, 1024  ;;  %p525_p6 = scmp.lt.s32.totalorder %s44_s15, %s44_s15 }
  0x2b   :  { %p521_p5 = scmp.ne.s32.totalorder %s44_s15, %s520_s24  ;;  %p526_p7 = scmp.lt.s32.totalorder %s520_s24, %s520_s24 }
  0x2d   :  { %p527_p8 = por %p526_p7, %p525_p6 }
  0x2f   :  { %p528_p9 = pnand %p527_p8, %p521_p5 }
  0x31   :  { %531 = shalt.err (!%p528_p9)
}
  0x32   :  { %49 = dma.hbm_to_vmem [thread:$0]  %s666_s3, 1024, %s44_s15, [#allocation6], %s562_s27, %s562_s27, %s563_s28  }
  0x33   :  { %554 = dma.done.wait [#allocation3], 256  }
  0x34   :  { %555 = vsyncadd [#allocation3], 4294967040 }
  0x35   :  { %556 = dma.done.wait [#allocation6], 2048  }
  0x36   :  { %557 = vsyncadd [#allocation6], 4294965248  ;;  %v565_v0 = vmov 0.0   ;;  %vm566_vm0 = vmmov 0   ;;  %v448_v1 = vld [vmem:[#allocation2] sm:$0xff]   ;;  %v449_v2 = vld [vmem:[#allocation2 + $0x8] sm:$0xff]  }
  0x37   :  { %392 = vmatprep.subr.bf16.mxu0 %v565_v0  ;;  %396 = vmatprep.mubr.msk.bf16.mxu0 %vm566_vm0, %v565_v0  ;;  %v60_v3 = vld [vmem:[%s663_s0] sm:$0xff]  ;;  %v450_v4 = vld [vmem:[#allocation5] sm:$0xff]   ;;  %v451_v6 = vld [vmem:[#allocation5 + $0x8] sm:$0xff]   ;;  %vm78_vm1 = vcmask 261120   ;;  %s567_s0 = smov [#allocation8]   ;;  %vm334_vm2 = vcmask 130048  }
  0x38   :  { %400 = vmatprep.subr.bf16.mxu1 %v565_v0  ;;  %416 = vmatprep.mubr.msk.bf16.mxu1 %vm566_vm0, %v565_v0  ;;  %v61_v5 = vpack.c.bf16 %v60_v3, %v60_v3  ;;  %v452_v7 = vld [vmem:[#allocation5 + $0x10] sm:$0xff]   ;;  %v453_v8 = vld [vmem:[#allocation5 + $0x18] sm:$0xff]   ;;  %v454_v9 = vld [vmem:[#allocation5 + $0x20] sm:$0xff]   ;;  %s342_s3 = sshll.u32 %s567_s0, 4  ;;  %s343_s3 = int_to_ptr.vmem [resolvable:$true] %s342_s3 }
  0x39   :  { %393 = vmatpush3.bf16.msra.mxu0 %v448_v1  ;;  %401 = vmatpush3.bf16.msra.mxu1 %v450_v4  ;;  %v455_v10 = vld [vmem:[#allocation5 + $0x28] sm:$0xff]   ;;  %v456_v11 = vld [vmem:[#allocation5 + $0x30] sm:$0xff]   ;;  %v457_v12 = vld [vmem:[#allocation5 + $0x38] sm:$0xff]   ;;  %s532_s27 = scalar_lea.vmem %s343_s3, 128  ;;  %p537_p11 = scmp.lt.s32.totalorder %s343_s3, %s343_s3 }
  0x3a   :  { %394 = vmatprep.subr.bf16.mxu0 %v565_v0  ;;  %402 = vmatprep.subr.bf16.mxu1 %v565_v0  ;;  %v458_v13 = vld [vmem:[#allocation7] sm:$0xff]   ;;  %v459_v14 = vld [vmem:[#allocation7 + $0x8] sm:$0xff]   ;;  %v460_v15 = vld [vmem:[#allocation7 + $0x10] sm:$0xff]   ;;  %p533_p10 = scmp.ne.s32.totalorder %s343_s3, %s532_s27  ;;  %p538_p12 = scmp.lt.s32.totalorder %s532_s27, %s532_s27 }
  0x3b   :  { %v461_v16 = vld [vmem:[#allocation7 + $0x18] sm:$0xff]   ;;  %v462_v17 = vld [vmem:[#allocation7 + $0x20] sm:$0xff]   ;;  %v463_v18 = vld [vmem:[#allocation7 + $0x28] sm:$0xff]  }
  0x3c   :  { %v464_v19 = vld [vmem:[#allocation7 + $0x30] sm:$0xff]   ;;  %v465_v26 = vld [vmem:[#allocation7 + $0x38] sm:$0xff]   ;;  %p539_p13 = por %p538_p12, %p537_p11 }
  0x3d   :  { %395 = vmatpush3.bf16.msra.mxu0 %v449_v2  ;;  %403 = vmatpush3.bf16.msra.mxu1 %v451_v6 }
  0x3e   :  { %420 = vmatprep.subr.bf16.mxu0 %v565_v0  ;;  %404 = vmatprep.subr.bf16.mxu1 %v565_v0  ;;  %p540_p0 = pnand %p539_p13, %p533_p10 }
  0x40   :  { %397 = vmatmul.mubr.msk.bf16.vlgmr.msra.gmra.mrb[0].mxu0 %vm78_vm1, %v61_v5 }
  0x41   :  { %436 = vmatprep.mubr.msk.bf16.mxu0 %vm566_vm0, %v565_v0  ;;  %405 = vmatpush3.bf16.msra.mxu1 %v452_v7 }
  0x42   :  { %406 = vmatprep.subr.bf16.mxu1 %v565_v0  ;;  %421 = vmatpush3.bf16.msra.mxu0 %v458_v13 }
  0x43   :  { %422 = vmatprep.subr.bf16.mxu0 %v565_v0 }
  0x45   :  { %407 = vmatpush3.bf16.msra.mxu1 %v453_v8 }
  0x46   :  { %408 = vmatprep.subr.bf16.mxu1 %v565_v0  ;;  %423 = vmatpush3.bf16.msra.mxu0 %v459_v14 }
  0x47   :  { %424 = vmatprep.subr.bf16.mxu0 %v565_v0 }
  0x49   :  { %409 = vmatpush3.bf16.msra.mxu1 %v454_v9 }
  0x4a   :  { %410 = vmatprep.subr.bf16.mxu1 %v565_v0  ;;  %425 = vmatpush3.bf16.msra.mxu0 %v460_v15 }
  0x4b   :  { %426 = vmatprep.subr.bf16.mxu0 %v565_v0 }
  0x4d   :  { %411 = vmatpush3.bf16.msra.mxu1 %v455_v10 }
  0x4e   :  { %412 = vmatprep.subr.bf16.mxu1 %v565_v0  ;;  %427 = vmatpush3.bf16.msra.mxu0 %v461_v16 }
  0x4f   :  { %428 = vmatprep.subr.bf16.mxu0 %v565_v0 }
  0x51   :  { %413 = vmatpush3.bf16.msra.mxu1 %v456_v11 }
  0x52   :  { %414 = vmatprep.subr.bf16.mxu1 %v565_v0  ;;  %429 = vmatpush3.bf16.msra.mxu0 %v462_v17 }
  0x53   :  { %430 = vmatprep.subr.bf16.mxu0 %v565_v0 }
  0x55   :  { %415 = vmatpush3.bf16.msra.mxu1 %v457_v12 }
  0x56   :  { %431 = vmatpush3.bf16.msra.mxu0 %v463_v18 }
  0x57   :  { %432 = vmatprep.subr.bf16.mxu0 %v565_v0 }
  0x5a   :  { %433 = vmatpush3.bf16.msra.mxu0 %v464_v19 }
  0x5b   :  { %434 = vmatprep.subr.bf16.mxu0 %v565_v0 }
  0x5e   :  { %435 = vmatpush3.bf16.msra.mxu0 %v465_v26 }
 0x113   :  { %v116_v20 = vpop.f32.mrb[0].mxu0 }
 0x114   :  { %v122_v21 = vmax.f32 %v116_v20, 0.0  ;;  %v398_v22 = vpop.f32.mrb[1].mxu0 }
 0x115   :  { %v119_v23 = vpop.f32.mrb[2].mxu0 }
 0x116   :  { %v123_v24 = vpack.c.bf16 %v122_v21, %v122_v21  ;;  %v399_v25 = vpop.f32.mrb[3].mxu0 }
 0x118   :  { %417 = vmatmul.mubr.bf16.vlgmr.msra.gmra.mrb[0].mxu1 %v123_v24 }
 0x1eb   :  { %v222_v27 = vpop.f32.mrb[0].mxu1 }
 0x1ec   :  { %v228_v28 = vmax.f32 %v222_v27, 0.0  ;;  %v418_v29 = vpop.f32.mrb[1].mxu1 }
 0x1ed   :  { %v225_v30 = vpop.f32.mrb[2].mxu1 }
 0x1ee   :  { %v229_v31 = vpack.c.bf16 %v228_v28, %v228_v28  ;;  %v419_v32 = vpop.f32.mrb[3].mxu1 }
 0x1f0   :  { %437 = vmatmul.mubr.bf16.vlgmr.msra.gmra.mrb[4].mxu0 %v229_v31 }
 0x2c3   :  { %v328_v33 = vpop.f32.mrb[4].mxu0 }
 0x2c4   :  { %v438_v34 = vpop.f32.mrb[5].mxu0  ;;  %335 = vst.msk [vmem:[#allocation8] sm:$0xff] %vm334_vm2, %v328_v33 }
 0x2c5   :  { %v331_v35 = vpop.f32.mrb[6].mxu0 }
 0x2c6   :  { %543 = shalt.err (!%p540_p0)
}
 0x2c7   :  { %s544_s30 = scalar_lea.hbm %s667_s4, 128 }
 0x2c8   :  { %p545_p1 = scmp.ne.s32.totalorder %s667_s4, %s544_s30  ;;  %p548_p2 = scmp.lt.u32.totalorder %s544_s30, %s667_s4 }
 0x2ca   :  { %p550_p3 = pnand %p548_p2, %p545_p1 }
 0x2cc   :  { %553 = shalt.err (!%p550_p3)
}
 0x2cd   :  { %345 = dma.vmem_to_hbm [thread:$0]  %s343_s3, 128, %s667_s4, [#allocation4]   ;;  %v439_v36 = vpop.f32.mrb[7].mxu0 }
 0x2ce   :  { %558 = dma.done.wait [#allocation4], 128  }
 0x2cf   :  { %559 = vsyncadd [#allocation4], 4294967168 }
 0x2d0   :  { %349 = vsyncpa [#allocation3], 1 }
 0x2d1   :  { %350 = vsyncpa [#allocation6], 1 }
 0x2d2   :  { %351 = vsyncpa [#allocation4], 1 }

</bundles_post_ra>
